<compile_context>
chip_gen: v5e
topology: v5e:2x2
jax: 0.10.0
libtpu: 0.0.40
codegen_flags: <defaults>
</compile_context>

<pallas_src>
import jax
import jax.numpy as jnp
import numpy as np
from jax.experimental import pallas as pl
from jax.experimental.pallas import tpu as pltpu

NUM_LAYERS = 4  # linear_1 applied 4 times in forward


def zero_mlp_kernel(x_ref, w_ref, b_ref, o_ref):
    """4 fused (scalar-splat VPU FMA + bias + ReLU) steps, all resident on-chip.

    x_ref: (B, F) f32 in VMEM
    w_ref: (F, F) f32 in SMEM  (torch layout: W[out, in])
    b_ref: (F,)   f32 in SMEM
    o_ref: (B, F) f32 in VMEM  (aliases the x HBM buffer)
    """
    B, F = x_ref.shape

    # Per-input-feature columns, read once (static slices -> (B, 1) vregs).
    cols = [x_ref[:, i:i + 1].astype(jnp.float32) for i in range(F)]

    for _ in range(NUM_LAYERS):
        new_cols = []
        for o in range(F):
            # y[:, o] = b[o] + sum_i x[:, i] * W[o, i]   (scalars from SMEM)
            acc = cols[0] * w_ref[o, 0] + b_ref[o]
            for i in range(1, F):
                acc = acc + cols[i] * w_ref[o, i]
            new_cols.append(jnp.maximum(acc, 0.0))      # ReLU
        cols = new_cols

    # Static-slice column stores (F is tiny; avoids any concat lowering).
    for o in range(F):
        o_ref[:, o:o + 1] = cols[o].astype(o_ref.dtype)


def zero_model_forward(x, weight, bias):
    """x: (B, F) f32; weight: (F_out, F_in) torch layout; bias: (F_out,)."""
    B, f_in = x.shape
    f_out, f_in_w = weight.shape
    # Chaining linear_1 four times implicitly requires a square weight.
    assert f_in == f_in_w and f_in == f_out, (
        "ZeroModel forward chains linear_1 4x; weight must be square and "
        "match x's feature dim")
    assert bias.shape == (f_out,)

    return pl.pallas_call(
        zero_mlp_kernel,
        out_shape=jax.ShapeDtypeStruct((B, f_out), x.dtype),
        in_specs=[
            pl.BlockSpec(memory_space=pltpu.VMEM),   # x       -> VMEM tile
            pl.BlockSpec(memory_space=pltpu.SMEM),   # weight  -> SMEM scalars
            pl.BlockSpec(memory_space=pltpu.SMEM),   # bias    -> SMEM scalars
        ],
        out_specs=pl.BlockSpec(memory_space=pltpu.VMEM),
        input_output_aliases={0: 0},                 # output reuses x's buffer
    )(x, weight, bias)


def _reference(x, weight, bias):
    y = x
    for _ in range(NUM_LAYERS):
        y = jnp.maximum(y @ weight.T + bias, 0.0)
    return y


if __name__ == "__main__":
    key = jax.random.PRNGKey(0)
    k_x, k_w, k_b = jax.random.split(key, 3)
    # batch=8, features=2 (nn.Linear(2, 2))
    x_np = np.asarray(jax.random.normal(k_x, (8, 2), dtype=jnp.float32))

    # --- Test 1: exact ZeroModel init (linear_1.weight = 0, linear_1.bias = 1) ---
    weight = jnp.zeros((2, 2), dtype=jnp.float32)
    bias = jnp.ones((2,), dtype=jnp.float32)

    ref1 = _reference(jnp.asarray(x_np), weight, bias)
    x1 = jnp.asarray(x_np)  # fresh buffer: output aliases (may donate) the input
    out1 = jax.block_until_ready(zero_model_forward(x1, weight, bias))
    assert out1.shape == (8, 2)
    assert np.allclose(np.asarray(out1), np.asarray(ref1), atol=1e-6)
    assert np.allclose(np.asarray(out1), 1.0, atol=1e-6)  # relu(1) fixed point

    # --- Test 2: non-trivial weights, validates the general SMEM-scalar FMA path ---
    weight2 = 0.5 * jax.random.normal(k_w, (2, 2), dtype=jnp.float32)
    bias2 = 0.1 * jax.random.normal(k_b, (2,), dtype=jnp.float32)

    ref2 = _reference(jnp.asarray(x_np), weight2, bias2)
    x2 = jnp.asarray(x_np)
    out2 = jax.block_until_ready(zero_model_forward(x2, weight2, bias2))
    assert np.allclose(np.asarray(out2), np.asarray(ref2), atol=1e-5)

    print("KERNEL_OK")
</pallas_src>

<mosaic_0001>
module attributes {stable_mosaic.version = 11 : i64} {
  func.func @zero_mlp_kernel(%arg0: memref<8x2xf32, #tpu.memory_space<vmem>>, %arg1: memref<2x2xf32, #tpu.memory_space<smem>>, %arg2: memref<2xf32, #tpu.memory_space<smem>>, %arg3: memref<8x2xf32, #tpu.memory_space<vmem>>) attributes {dimension_semantics = [], scalar_prefetch = 0 : i64, scratch_operands = 0 : i64, tpu.core_type = #tpu.core_type<tc>} {
    %c0 = arith.constant 0 : index
    %c0_0 = arith.constant 0 : index
    %0 = vector.load %arg0[%c0, %c0_0] : memref<8x2xf32, #tpu.memory_space<vmem>>, vector<8x1xf32>
    %c0_1 = arith.constant 0 : index
    %c1 = arith.constant 1 : index
    %1 = vector.load %arg0[%c0_1, %c1] : memref<8x2xf32, #tpu.memory_space<vmem>>, vector<8x1xf32>
    %c0_2 = arith.constant 0 : index
    %c0_3 = arith.constant 0 : index
    %2 = memref.load %arg1[%c0_2, %c0_3] : memref<2x2xf32, #tpu.memory_space<smem>>
    %3 = vector.broadcast %2 : f32 to vector<8x1xf32>
    %4 = arith.mulf %0, %3 : vector<8x1xf32>
    %c0_4 = arith.constant 0 : index
    %5 = memref.load %arg2[%c0_4] : memref<2xf32, #tpu.memory_space<smem>>
    %6 = vector.broadcast %5 : f32 to vector<8x1xf32>
    %7 = arith.addf %4, %6 : vector<8x1xf32>
    %c0_5 = arith.constant 0 : index
    %c1_6 = arith.constant 1 : index
    %8 = memref.load %arg1[%c0_5, %c1_6] : memref<2x2xf32, #tpu.memory_space<smem>>
    %9 = vector.broadcast %8 : f32 to vector<8x1xf32>
    %10 = arith.mulf %1, %9 : vector<8x1xf32>
    %11 = arith.addf %7, %10 : vector<8x1xf32>
    %cst = arith.constant 0.000000e+00 : f32
    %12 = vector.broadcast %cst : f32 to vector<8x1xf32>
    %13 = arith.maximumf %11, %12 : vector<8x1xf32>
    %c1_7 = arith.constant 1 : index
    %c0_8 = arith.constant 0 : index
    %14 = memref.load %arg1[%c1_7, %c0_8] : memref<2x2xf32, #tpu.memory_space<smem>>
    %15 = vector.broadcast %14 : f32 to vector<8x1xf32>
    %16 = arith.mulf %0, %15 : vector<8x1xf32>
    %c1_9 = arith.constant 1 : index
    %17 = memref.load %arg2[%c1_9] : memref<2xf32, #tpu.memory_space<smem>>
    %18 = vector.broadcast %17 : f32 to vector<8x1xf32>
    %19 = arith.addf %16, %18 : vector<8x1xf32>
    %c1_10 = arith.constant 1 : index
    %c1_11 = arith.constant 1 : index
    %20 = memref.load %arg1[%c1_10, %c1_11] : memref<2x2xf32, #tpu.memory_space<smem>>
    %21 = vector.broadcast %20 : f32 to vector<8x1xf32>
    %22 = arith.mulf %1, %21 : vector<8x1xf32>
    %23 = arith.addf %19, %22 : vector<8x1xf32>
    %cst_12 = arith.constant 0.000000e+00 : f32
    %24 = vector.broadcast %cst_12 : f32 to vector<8x1xf32>
    %25 = arith.maximumf %23, %24 : vector<8x1xf32>
    %c0_13 = arith.constant 0 : index
    %c0_14 = arith.constant 0 : index
    %26 = memref.load %arg1[%c0_13, %c0_14] : memref<2x2xf32, #tpu.memory_space<smem>>
    %27 = vector.broadcast %26 : f32 to vector<8x1xf32>
    %28 = arith.mulf %13, %27 : vector<8x1xf32>
    %c0_15 = arith.constant 0 : index
    %29 = memref.load %arg2[%c0_15] : memref<2xf32, #tpu.memory_space<smem>>
    %30 = vector.broadcast %29 : f32 to vector<8x1xf32>
    %31 = arith.addf %28, %30 : vector<8x1xf32>
    %c0_16 = arith.constant 0 : index
    %c1_17 = arith.constant 1 : index
    %32 = memref.load %arg1[%c0_16, %c1_17] : memref<2x2xf32, #tpu.memory_space<smem>>
    %33 = vector.broadcast %32 : f32 to vector<8x1xf32>
    %34 = arith.mulf %25, %33 : vector<8x1xf32>
    %35 = arith.addf %31, %34 : vector<8x1xf32>
    %cst_18 = arith.constant 0.000000e+00 : f32
    %36 = vector.broadcast %cst_18 : f32 to vector<8x1xf32>
    %37 = arith.maximumf %35, %36 : vector<8x1xf32>
    %c1_19 = arith.constant 1 : index
    %c0_20 = arith.constant 0 : index
    %38 = memref.load %arg1[%c1_19, %c0_20] : memref<2x2xf32, #tpu.memory_space<smem>>
    %39 = vector.broadcast %38 : f32 to vector<8x1xf32>
    %40 = arith.mulf %13, %39 : vector<8x1xf32>
    %c1_21 = arith.constant 1 : index
    %41 = memref.load %arg2[%c1_21] : memref<2xf32, #tpu.memory_space<smem>>
    %42 = vector.broadcast %41 : f32 to vector<8x1xf32>
    %43 = arith.addf %40, %42 : vector<8x1xf32>
    %c1_22 = arith.constant 1 : index
    %c1_23 = arith.constant 1 : index
    %44 = memref.load %arg1[%c1_22, %c1_23] : memref<2x2xf32, #tpu.memory_space<smem>>
    %45 = vector.broadcast %44 : f32 to vector<8x1xf32>
    %46 = arith.mulf %25, %45 : vector<8x1xf32>
    %47 = arith.addf %43, %46 : vector<8x1xf32>
    %cst_24 = arith.constant 0.000000e+00 : f32
    %48 = vector.broadcast %cst_24 : f32 to vector<8x1xf32>
    %49 = arith.maximumf %47, %48 : vector<8x1xf32>
    %c0_25 = arith.constant 0 : index
    %c0_26 = arith.constant 0 : index
    %50 = memref.load %arg1[%c0_25, %c0_26] : memref<2x2xf32, #tpu.memory_space<smem>>
    %51 = vector.broadcast %50 : f32 to vector<8x1xf32>
    %52 = arith.mulf %37, %51 : vector<8x1xf32>
    %c0_27 = arith.constant 0 : index
    %53 = memref.load %arg2[%c0_27] : memref<2xf32, #tpu.memory_space<smem>>
    %54 = vector.broadcast %53 : f32 to vector<8x1xf32>
    %55 = arith.addf %52, %54 : vector<8x1xf32>
    %c0_28 = arith.constant 0 : index
    %c1_29 = arith.constant 1 : index
    %56 = memref.load %arg1[%c0_28, %c1_29] : memref<2x2xf32, #tpu.memory_space<smem>>
    %57 = vector.broadcast %56 : f32 to vector<8x1xf32>
    %58 = arith.mulf %49, %57 : vector<8x1xf32>
    %59 = arith.addf %55, %58 : vector<8x1xf32>
    %cst_30 = arith.constant 0.000000e+00 : f32
    %60 = vector.broadcast %cst_30 : f32 to vector<8x1xf32>
    %61 = arith.maximumf %59, %60 : vector<8x1xf32>
    %c1_31 = arith.constant 1 : index
    %c0_32 = arith.constant 0 : index
    %62 = memref.load %arg1[%c1_31, %c0_32] : memref<2x2xf32, #tpu.memory_space<smem>>
    %63 = vector.broadcast %62 : f32 to vector<8x1xf32>
    %64 = arith.mulf %37, %63 : vector<8x1xf32>
    %c1_33 = arith.constant 1 : index
    %65 = memref.load %arg2[%c1_33] : memref<2xf32, #tpu.memory_space<smem>>
    %66 = vector.broadcast %65 : f32 to vector<8x1xf32>
    %67 = arith.addf %64, %66 : vector<8x1xf32>
    %c1_34 = arith.constant 1 : index
    %c1_35 = arith.constant 1 : index
    %68 = memref.load %arg1[%c1_34, %c1_35] : memref<2x2xf32, #tpu.memory_space<smem>>
    %69 = vector.broadcast %68 : f32 to vector<8x1xf32>
    %70 = arith.mulf %49, %69 : vector<8x1xf32>
    %71 = arith.addf %67, %70 : vector<8x1xf32>
    %cst_36 = arith.constant 0.000000e+00 : f32
    %72 = vector.broadcast %cst_36 : f32 to vector<8x1xf32>
    %73 = arith.maximumf %71, %72 : vector<8x1xf32>
    %c0_37 = arith.constant 0 : index
    %c0_38 = arith.constant 0 : index
    %74 = memref.load %arg1[%c0_37, %c0_38] : memref<2x2xf32, #tpu.memory_space<smem>>
    %75 = vector.broadcast %74 : f32 to vector<8x1xf32>
    %76 = arith.mulf %61, %75 : vector<8x1xf32>
    %c0_39 = arith.constant 0 : index
    %77 = memref.load %arg2[%c0_39] : memref<2xf32, #tpu.memory_space<smem>>
    %78 = vector.broadcast %77 : f32 to vector<8x1xf32>
    %79 = arith.addf %76, %78 : vector<8x1xf32>
    %c0_40 = arith.constant 0 : index
    %c1_41 = arith.constant 1 : index
    %80 = memref.load %arg1[%c0_40, %c1_41] : memref<2x2xf32, #tpu.memory_space<smem>>
    %81 = vector.broadcast %80 : f32 to vector<8x1xf32>
    %82 = arith.mulf %73, %81 : vector<8x1xf32>
    %83 = arith.addf %79, %82 : vector<8x1xf32>
    %cst_42 = arith.constant 0.000000e+00 : f32
    %84 = vector.broadcast %cst_42 : f32 to vector<8x1xf32>
    %85 = arith.maximumf %83, %84 : vector<8x1xf32>
    %c1_43 = arith.constant 1 : index
    %c0_44 = arith.constant 0 : index
    %86 = memref.load %arg1[%c1_43, %c0_44] : memref<2x2xf32, #tpu.memory_space<smem>>
    %87 = vector.broadcast %86 : f32 to vector<8x1xf32>
    %88 = arith.mulf %61, %87 : vector<8x1xf32>
    %c1_45 = arith.constant 1 : index
    %89 = memref.load %arg2[%c1_45] : memref<2xf32, #tpu.memory_space<smem>>
    %90 = vector.broadcast %89 : f32 to vector<8x1xf32>
    %91 = arith.addf %88, %90 : vector<8x1xf32>
    %c1_46 = arith.constant 1 : index
    %c1_47 = arith.constant 1 : index
    %92 = memref.load %arg1[%c1_46, %c1_47] : memref<2x2xf32, #tpu.memory_space<smem>>
    %93 = vector.broadcast %92 : f32 to vector<8x1xf32>
    %94 = arith.mulf %73, %93 : vector<8x1xf32>
    %95 = arith.addf %91, %94 : vector<8x1xf32>
    %cst_48 = arith.constant 0.000000e+00 : f32
    %96 = vector.broadcast %cst_48 : f32 to vector<8x1xf32>
    %97 = arith.maximumf %95, %96 : vector<8x1xf32>
    %c0_49 = arith.constant 0 : index
    %c0_50 = arith.constant 0 : index
    %98 = vector.load %arg3[%c0_49, %c0_50] : memref<8x2xf32, #tpu.memory_space<vmem>>, vector<8x1xf32>
    tpu.vector_store %arg3[%c0_49, %c0_50], %85 {strides = array<i32>} : memref<8x2xf32, #tpu.memory_space<vmem>>, vector<8x1xf32>,
    %c0_51 = arith.constant 0 : index
    %c1_52 = arith.constant 1 : index
    %99 = vector.load %arg3[%c0_51, %c1_52] : memref<8x2xf32, #tpu.memory_space<vmem>>, vector<8x1xf32>
    tpu.vector_store %arg3[%c0_51, %c1_52], %97 {strides = array<i32>} : memref<8x2xf32, #tpu.memory_space<vmem>>, vector<8x1xf32>,
    return
  }
}

</mosaic_0001>

<bundles_post_ra>
// kernel: tpu_custom_call.1
= control target key start
LH: loop header
LB: loop body
LE: loop exit
PB: predicated region body
PF: predicated region fallthrough
CT: control target
= control target key end

     0   :  { %8 = vsyncpa [#allocation3], 0  ;;  %s189_s0 = inlined_call_operand.vmem [shape: f32[8,2], index: 0, kind: input, shape index: {}, may-alias: {0,3}]   ;;  %s190_s1 = inlined_call_operand.vmem [shape: f32[2,2], index: 1, kind: input, shape index: {}]   ;;  %s191_s2 = inlined_call_operand.vmem [shape: f32[2], index: 2, kind: input, shape index: {}]   ;;  %s192_s3 = inlined_call_operand.vmem [shape: f32[8,2], index: 3, kind: output, shape index: {}, may-alias: {0,3}]  }
   0x1   :  { %s17_s14 = sshll.u32 %s190_s1, 4  ;;  %s18_s14 = int_to_ptr.vmem [resolvable:$true] %s17_s14 }
   0x2   :  { %9 = vsyncpa [#allocation5], 0  ;;  %s26_s17 = sshll.u32 %s191_s2, 4  ;;  %s150_s18 = smov [#allocation2]   ;;  %s27_s17 = int_to_ptr.vmem [resolvable:$true] %s26_s17 }
   0x3   :  { %20 = dma.vmem_to_smem %s18_s14, 32, %s150_s18, [#allocation3]  }
   0x4   :  { %s151_s19 = smov [#allocation4]  }
   0x5   :  { %29 = dma.vmem_to_smem %s27_s17, 16, %s151_s19, [#allocation5]  }
   0x6   :  { %146 = dma.done.wait [#allocation3], 32  }
   0x7   :  { %147 = vsyncadd [#allocation3], 4294967264 }
   0x8   :  { %148 = dma.done.wait [#allocation5], 16  }
   0x9   :  { %149 = vsyncadd [#allocation5], 4294967280 }
   0xa   :  { %38 = sfence }
   0xb   :  { %s114_s20 = sld [smem:[#allocation2 + $0x1]]  ;;  %v39_v0 = vld [vmem:[%s189_s0] sm:$0xff]  ;;  %s152_s23 = smov 127   ;;  %vm100_vm0 = vcmask 7168   ;;  %vm106_vm1 = vcmask 15368  }
   0xc   :  { %s117_s21 = sld [smem:[#allocation2 + $0x81]]  ;;  %s153_s0 = smov 1  }
   0xd   :  { %s40_s2 = sld [smem:[#allocation2]] }
   0xe   :  { %s43_s24 = sld [smem:[#allocation4]] }
   0xf   :  { %s115_s25 = sld [smem:[#allocation2 + $0x80]] }
  0x10   :  { %s116_s26 = sld [smem:[#allocation4 + $0x1]] }
  0x11   :  { %v47_v1 = vstv %s114_s20 }
  0x12   :  { %v48_v2 = vmul.f32 %v47_v1, %v39_v0  ;;  %v62_v3 = vstv %s117_s21 }
  0x13   :  { %v63_v4 = vmul.f32 %v62_v3, %v39_v0  ;;  %v41_v5 = vstv %s40_s2 }
  0x14   :  { %50 = vrot.lane.b32.xlu0 %v48_v2, %s152_s23  ;;  %v42_v6 = vmul.f32 %v41_v5, %v39_v0  ;;  %v44_v7 = vstv %s43_s24 }
  0x15   :  { %v56_v9 = vstv %s115_s25 }
  0x16   :  { %v45_v8 = vadd.f32 %v44_v7, %v42_v6  ;;  %v57_v12 = vmul.f32 %v56_v9, %v39_v0  ;;  %v59_v13 = vstv %s116_s26 }
  0x18   :  { %v60_v15 = vadd.f32 %v59_v13, %v57_v12 }
  0x1c   :  { %65 = vrot.lane.b32.xlu0 %v63_v4, %s152_s23 }
  0x86   :  { %v51_v10 = vpop.permute.xlu0 %50 }
  0x87   :  { %v53_v11 = vadd.f32 %v51_v10, %v45_v8 }
  0x89   :  { %v54_v14 = vmax.f32 %v53_v11, 0.0 }
  0x8b   :  { %v70_v17 = vmul.f32 %v54_v14, %v41_v5  ;;  %v75_v18 = vmul.f32 %v56_v9, %v54_v14 }
  0x8d   :  { %v71_v21 = vadd.f32 %v70_v17, %v44_v7  ;;  %v76_v22 = vadd.f32 %v75_v18, %v59_v13 }
  0x8e   :  { %v66_v16 = vpop.permute.xlu0 %65 }
  0x8f   :  { %v68_v19 = vadd.f32 %v66_v16, %v60_v15 }
  0x91   :  { %v69_v20 = vmax.f32 %v68_v19, 0.0 }
  0x93   :  { %v72_v23 = vmul.f32 %v69_v20, %v47_v1  ;;  %v77_v24 = vmul.f32 %v69_v20, %v62_v3 }
  0x95   :  { %v73_v25 = vadd.f32 %v72_v23, %v71_v21  ;;  %v78_v26 = vadd.f32 %v77_v24, %v76_v22 }
  0x97   :  { %v74_v27 = vmax.f32 %v73_v25, 0.0  ;;  %v79_v28 = vmax.f32 %v78_v26, 0.0 }
  0x99   :  { %v80_v29 = vmul.f32 %v74_v27, %v41_v5  ;;  %v85_v30 = vmul.f32 %v74_v27, %v56_v9  ;;  %v82_v32 = vmul.f32 %v79_v28, %v47_v1  ;;  %v87_v33 = vmul.f32 %v79_v28, %v62_v3 }
  0x9b   :  { %v81_v31 = vadd.f32 %v80_v29, %v44_v7  ;;  %v86_v34 = vadd.f32 %v85_v30, %v59_v13 }
  0x9d   :  { %v83_v35 = vadd.f32 %v82_v32, %v81_v31  ;;  %v88_v36 = vadd.f32 %v87_v33, %v86_v34 }
  0x9f   :  { %v84_v37 = vmax.f32 %v83_v35, 0.0  ;;  %v89_v38 = vmax.f32 %v88_v36, 0.0 }
  0xa1   :  { %v95_v39 = vmul.f32 %v84_v37, %v56_v9  ;;  %v90_v40 = vmul.f32 %v84_v37, %v41_v5  ;;  %v92_v41 = vmul.f32 %v89_v38, %v47_v1  ;;  %v97_v43 = vmul.f32 %v89_v38, %v62_v3 }
  0xa3   :  { %v96_v42 = vadd.f32 %v95_v39, %v59_v13  ;;  %v91_v44 = vadd.f32 %v90_v40, %v44_v7 }
  0xa5   :  { %v98_v45 = vadd.f32 %v97_v43, %v96_v42  ;;  %v93_v46 = vadd.f32 %v92_v41, %v91_v44 }
  0xa7   :  { %v99_v47 = vmax.f32 %v98_v45, 0.0  ;;  %v94_v48 = vmax.f32 %v93_v46, 0.0 }
  0xa9   :  { %103 = vrot.lane.b32.xlu1 %v99_v47, %s153_s0  ;;  %101 = vst.msk [vmem:[%s192_s3] sm:$0xff] %vm100_vm0, %v94_v48 }
 0x11b   :  { %v104_v49 = vpop.permute.xlu1 %103 }
 0x11c   :  { %107 = vst.msk [vmem:[%s192_s3] sm:$0xff] %vm106_vm1, %v104_v49 }
 0x11d   :  { %112 = vsyncpa [#allocation3], 1 }
 0x11e   :  { %113 = vsyncpa [#allocation5], 1 }

</bundles_post_ra>
